<compile_context>
chip_gen: v6e
topology: v6e:2x2x1
jax: 0.10.0
libtpu: 0.0.40
codegen_flags: <defaults>
</compile_context>

<pallas_src>
import functools

import jax
import jax.numpy as jnp
from jax.experimental import pallas as pl
from jax.experimental.pallas import tpu as pltpu

VOCAB = 50        # synthetic vocab size (emb_matrix rows)
VOCAB_PAD = 128   # pre-folded table rows, padded so the one-hot gather is lane-dense
EMB = 16          # embedding_dim = emb_matrix.shape[1]
HID = 32          # hidden_dim
NCLS = 5          # num_classes
NCLS_PAD = 128    # lane-dense FC output width (sliced back to NCLS outside)

assert VOCAB <= VOCAB_PAD, "one-hot gather assumes the vocab fits in one 128-lane tile"


def lstm_fc_kernel(ids_ref, len_ref, tbl_ref, w_hh_ref, w_fc_ref, b_fc_ref,
                   out_ref, xg_sc, *, use_bf16_mxu=False):
    """Single grid step: fused embedding+input GEMM, full T-step recurrence, then FC."""
    BP = len_ref.shape[0]                       # padded batch (multiple of 8)
    TB = ids_ref.shape[0]                       # T * BP
    T = TB // BP
    H = HID

    # Phase 1: embedding lookup + input projection, fused.  Rows of tbl_ref are
    # emb[v] @ W_ih^T + (b_ih + b_hh); a one-hot MXU GEMM gathers them exactly.
    # xg_sc rows are time-major: [t*BP : (t+1)*BP].
    ids = ids_ref[...]                                                   # (T*BP, 1) int32
    vocab_iota = jax.lax.broadcasted_iota(jnp.int32, (TB, tbl_ref.shape[0]), 1)
    onehot = (vocab_iota == ids).astype(jnp.float32)                     # (T*BP, VOCAB_PAD)
    xg_sc[...] = jnp.dot(onehot, tbl_ref[...],
                         preferred_element_type=jnp.float32)             # (T*BP, 4H)

    # Loop-invariant hoists (JAX does not CSE broadcasts inside the unrolled loop).
    lens = len_ref[...]                         # (BP, 1) int32
    w_hh = w_hh_ref[...]                        # (H, 4H)
    if use_bf16_mxu:
        w_hh = w_hh.astype(jnp.bfloat16)
    lane = jax.lax.broadcasted_iota(jnp.int32, (BP, 4 * H), 1)
    # tanh(x) = 2*sigmoid(2x) - 1 : pre-scale only the g-gate lane block by 2.
    g_scale = jnp.where((lane >= 2 * H) & (lane < 3 * H),
                        jnp.float32(2.0), jnp.float32(1.0))              # (BP, 4H)

    def step(t, carry):
        h, c = carry
        row = pl.multiple_of(t * BP, BP)
        h_in = h.astype(jnp.bfloat16) if use_bf16_mxu else h
        gates = xg_sc[pl.ds(row, BP), :] + jnp.dot(
            h_in, w_hh, preferred_element_type=jnp.float32)              # (BP, 4H) f32

        # Single full-vreg EUP pass; PyTorch gate order (i, f, g, o).
        s = jax.nn.sigmoid(gates * g_scale)
        i_g = s[:, 0 * H:1 * H]
        f_g = s[:, 1 * H:2 * H]
        g_g = 2.0 * s[:, 2 * H:3 * H] - 1.0      # == tanh(gates_g)
        o_g = s[:, 3 * H:4 * H]

        c_new = f_g * c + i_g * g_g
        h_new = o_g * jnp.tanh(c_new)

        # pack_padded_sequence semantics: only update state while t < length[b].
        valid = t < lens                                                 # (BP, 1) bool
        return (jnp.where(valid, h_new, h), jnp.where(valid, c_new, c))

    h0 = jnp.zeros((BP, H), jnp.float32)
    c0 = jnp.zeros((BP, H), jnp.float32)
    hT, _ = jax.lax.fori_loop(0, T, step, (h0, c0), unroll=True)

    # fc(dropout(hidden[-1])) -- dropout is identity in eval mode.  Lane-dense store.
    out_ref[...] = (jnp.dot(hT, w_fc_ref[...], preferred_element_type=jnp.float32)
                    + b_fc_ref[...])


def custom_lstm_forward(ids, lengths, params, *, use_bf16_mxu=False):
    B, T = ids.shape
    BP = ((B + 7) // 8) * 8                     # pad batch to f32 sublane count

    # Only tiny int32 plumbing remains outside the kernel: time-major padded ids and
    # zero-length padding rows (so padded rows never update state).
    ids_tm = jnp.zeros((T, BP), jnp.int32).at[:, :B].set(ids.astype(jnp.int32).T)
    ids_tm = ids_tm.reshape(T * BP, 1)
    lens_pad = jnp.zeros((BP, 1), jnp.int32).at[:B, 0].set(lengths.astype(jnp.int32))

    kernel = functools.partial(lstm_fc_kernel, use_bf16_mxu=use_bf16_mxu)

    out = pl.pallas_call(
        kernel,
        out_shape=jax.ShapeDtypeStruct((BP, NCLS_PAD), jnp.float32),
        grid_spec=pltpu.PrefetchScalarGridSpec(
            num_scalar_prefetch=0,
            grid=(1,),
            in_specs=[
                pl.BlockSpec((T * BP, 1), lambda i: (0, 0)),            # ids (time-major)
                pl.BlockSpec((BP, 1), lambda i: (0, 0)),                # lengths
                pl.BlockSpec((VOCAB_PAD, 4 * HID), lambda i: (0, 0)),   # pre-folded emb@W_ih^T + b
                pl.BlockSpec((HID, 4 * HID), lambda i: (0, 0)),         # W_hh^T
                pl.BlockSpec((HID, NCLS_PAD), lambda i: (0, 0)),        # W_fc^T (padded)
                pl.BlockSpec((1, NCLS_PAD), lambda i: (0, 0)),          # b_fc (padded)
            ],
            out_specs=pl.BlockSpec((BP, NCLS_PAD), lambda i: (0, 0)),
            scratch_shapes=[
                pltpu.VMEM((T * BP, 4 * HID), jnp.float32),             # precomputed x-gates
            ],
        ),
        compiler_params=pltpu.CompilerParams(
            dimension_semantics=("arbitrary",)),
    )(ids_tm, lens_pad, params["xw_table"], params["w_hh_t"],
      params["w_fc_t_pad"], params["b_fc_pad"])
    return out[:B, :NCLS]


def prepare_params(emb, w_ih, w_hh, b_ih, b_hh, w_fc, b_fc):
    """One-time (weights-only) preprocessing: pre-fold embedding through the input
    projection and pad the FC weights to a lane-dense output."""
    tbl = emb @ w_ih.T + (b_ih + b_hh)[None, :]                          # (VOCAB, 4H)
    tbl_pad = jnp.zeros((VOCAB_PAD, 4 * HID), jnp.float32).at[:VOCAB].set(tbl)
    w_fc_pad = jnp.zeros((HID, NCLS_PAD), jnp.float32).at[:, :NCLS].set(w_fc.T)
    b_fc_pad = jnp.zeros((1, NCLS_PAD), jnp.float32).at[:, :NCLS].set(b_fc)
    return dict(
        # kernel operands
        xw_table=tbl_pad,
        w_hh_t=jnp.asarray(w_hh.T, jnp.float32),
        w_fc_t_pad=w_fc_pad,
        b_fc_pad=b_fc_pad,
        # raw weights for the pure-JAX reference
        emb=emb,
        w_ih_t=w_ih.T,
        b=(b_ih + b_hh).reshape(1, 4 * HID),
        w_fc_t=w_fc.T,
        b_fc=b_fc.reshape(1, NCLS),
    )


def reference_forward(ids, lengths, params):
    """Pure-JAX reference (mirrors PyTorch eval-mode forward)."""
    emb = jnp.take(params["emb"], ids, axis=0)     # (B, T, E)
    B, T, _ = emb.shape

    def step(carry, xs):
        h, c = carry
        x_t, t = xs
        gates = x_t @ params["w_ih_t"] + h @ params["w_hh_t"] + params["b"]
        i_g = jax.nn.sigmoid(gates[:, 0 * HID:1 * HID])
        f_g = jax.nn.sigmoid(gates[:, 1 * HID:2 * HID])
        g_g = jnp.tanh(gates[:, 2 * HID:3 * HID])
        o_g = jax.nn.sigmoid(gates[:, 3 * HID:4 * HID])
        c_new = f_g * c + i_g * g_g
        h_new = o_g * jnp.tanh(c_new)
        valid = (t < lengths)[:, None]
        return (jnp.where(valid, h_new, h), jnp.where(valid, c_new, c)), None

    h0 = jnp.zeros((B, HID), jnp.float32)
    c0 = jnp.zeros((B, HID), jnp.float32)
    (hT, _), _ = jax.lax.scan(step, (h0, c0),
                              (jnp.transpose(emb, (1, 0, 2)), jnp.arange(T)))
    return hT @ params["w_fc_t"] + params["b_fc"]


if __name__ == "__main__":
    key = jax.random.PRNGKey(0)
    kemb, k1, k2, k3, k4, k5, k6, kids = jax.random.split(key, 8)

    B, T = 2, 8
    emb_matrix = jax.random.normal(kemb, (VOCAB, EMB), jnp.float32) * 0.1
    w_ih = jax.random.normal(k1, (4 * HID, EMB), jnp.float32) * 0.1   # PyTorch (4H, E)
    w_hh = jax.random.normal(k2, (4 * HID, HID), jnp.float32) * 0.1   # PyTorch (4H, H)
    b_ih = jax.random.normal(k3, (4 * HID,), jnp.float32) * 0.1
    b_hh = jax.random.normal(k4, (4 * HID,), jnp.float32) * 0.1
    w_fc = jax.random.normal(k5, (NCLS, HID), jnp.float32) * 0.1      # PyTorch (C, H)
    b_fc = jax.random.normal(k6, (NCLS,), jnp.float32) * 0.1

    params = prepare_params(emb_matrix, w_ih, w_hh, b_ih, b_hh, w_fc, b_fc)

    ids = jax.random.randint(kids, (B, T), 0, VOCAB, dtype=jnp.int32)
    lengths = jnp.array([8, 5], dtype=jnp.int32)     # variable lengths (unsorted ok)

    ref = reference_forward(ids, lengths, params)

    # f32 path: tight tolerance (tiny slack only for the tanh==2*sigmoid(2x)-1 rewrite).
    out = custom_lstm_forward(ids, lengths, params, use_bf16_mxu=False)
    out = jax.block_until_ready(out)
    assert out.shape == (B, NCLS)
    assert jnp.allclose(out, ref, atol=1e-4, rtol=1e-4), (out, ref)

    # bf16 recurrent-MXU path: relaxed tolerance (bf16 mantissa on the h @ W_hh operands).
    out_bf16 = custom_lstm_forward(ids, lengths, params, use_bf16_mxu=True)
    out_bf16 = jax.block_until_ready(out_bf16)
    assert jnp.allclose(out_bf16, ref, atol=5e-2, rtol=5e-2), (out_bf16, ref)

    print("KERNEL_OK")
</pallas_src>

<mosaic_0001>
module attributes {stable_mosaic.version = 11 : i64} {
  func.func @lstm_fc_kernel(%arg0: i32, %arg1: memref<64x1xi32, #tpu.memory_space<vmem>>, %arg2: memref<8x1xi32, #tpu.memory_space<vmem>>, %arg3: memref<128x128xf32, #tpu.memory_space<vmem>>, %arg4: memref<32x128xf32, #tpu.memory_space<vmem>>, %arg5: memref<32x128xf32, #tpu.memory_space<vmem>>, %arg6: memref<1x128xf32, #tpu.memory_space<vmem>>, %arg7: memref<8x128xf32, #tpu.memory_space<vmem>>, %arg8: memref<64x128xf32, #tpu.memory_space<vmem>>) attributes {dimension_semantics = [#tpu.dimension_semantics<arbitrary>], iteration_bounds = array<i64: 1>, scalar_prefetch = 0 : i64, scratch_operands = 1 : i64, tpu.core_type = #tpu.core_type<tc>, window_params = [{pipeline_mode = #tpu.pipeline_mode<synchronous>, transform_indices = @transform_0, window_bounds = array<i64: 64, 1>}, {pipeline_mode = #tpu.pipeline_mode<synchronous>, transform_indices = @transform_1, window_bounds = array<i64: 8, 1>}, {pipeline_mode = #tpu.pipeline_mode<synchronous>, transform_indices = @transform_2, window_bounds = array<i64: 128, 128>}, {pipeline_mode = #tpu.pipeline_mode<synchronous>, transform_indices = @transform_3, window_bounds = array<i64: 32, 128>}, {pipeline_mode = #tpu.pipeline_mode<synchronous>, transform_indices = @transform_4, window_bounds = array<i64: 32, 128>}, {pipeline_mode = #tpu.pipeline_mode<synchronous>, transform_indices = @transform_5, window_bounds = array<i64: 1, 128>}, {pipeline_mode = #tpu.pipeline_mode<synchronous>, transform_indices = @transform_6, window_bounds = array<i64: 8, 128>}]} {
    %c0 = arith.constant 0 : index
    %c0_0 = arith.constant 0 : index
    %0 = vector.load %arg1[%c0, %c0_0] : memref<64x1xi32, #tpu.memory_space<vmem>>, vector<64x1xi32>
    %1 = tpu.iota {dimensions = array<i32: 1>} : vector<64x128xi32>
    %2 = vector.broadcast %0 : vector<64x1xi32> to vector<64x128xi32>
    %3 = arith.cmpi eq, %1, %2 : vector<64x128xi32>
    %4 = arith.extui %3 : vector<64x128xi1> to vector<64x128xi32>
    %5 = arith.sitofp %4 : vector<64x128xi32> to vector<64x128xf32>
    %c0_1 = arith.constant 0 : index
    %c0_2 = arith.constant 0 : index
    %6 = vector.load %arg3[%c0_1, %c0_2] : memref<128x128xf32, #tpu.memory_space<vmem>>, vector<128x128xf32>
    %cst = arith.constant dense<0.000000e+00> : vector<64x128xf32>
    %7 = tpu.matmul %5, %6, %cst {dimension_numbers = #tpu.dot_dimension_numbers<[1], [0], [0], [1], [0, 0, 1, 1], [], []>} : vector<64x128xf32>, vector<128x128xf32>, vector<64x128xf32> -> vector<64x128xf32>
    %c0_3 = arith.constant 0 : index
    %c0_4 = arith.constant 0 : index
    %8 = vector.load %arg8[%c0_3, %c0_4] : memref<64x128xf32, #tpu.memory_space<vmem>>, vector<64x128xf32>
    tpu.vector_store %arg8[%c0_3, %c0_4], %7 {strides = array<i32>} : memref<64x128xf32, #tpu.memory_space<vmem>>, vector<64x128xf32>,
    %c0_5 = arith.constant 0 : index
    %c0_6 = arith.constant 0 : index
    %9 = vector.load %arg2[%c0_5, %c0_6] : memref<8x1xi32, #tpu.memory_space<vmem>>, vector<8x1xi32>
    %c0_7 = arith.constant 0 : index
    %c0_8 = arith.constant 0 : index
    %10 = vector.load %arg4[%c0_7, %c0_8] : memref<32x128xf32, #tpu.memory_space<vmem>>, vector<32x128xf32>
    %11 = tpu.iota {dimensions = array<i32: 1>} : vector<8x128xi32>
    %c64_i32 = arith.constant 64 : i32
    %12 = vector.broadcast %c64_i32 : i32 to vector<8x128xi32>
    %13 = arith.cmpi sge, %11, %12 : vector<8x128xi32>
    %c96_i32 = arith.constant 96 : i32
    %14 = vector.broadcast %c96_i32 : i32 to vector<8x128xi32>
    %15 = arith.cmpi slt, %11, %14 : vector<8x128xi32>
    %16 = arith.andi %13, %15 : vector<8x128xi1>
    %cst_9 = arith.constant 2.000000e+00 : f32
    %cst_10 = arith.constant 1.000000e+00 : f32
    %17 = vector.broadcast %cst_9 : f32 to vector<8x128xf32>
    %18 = vector.broadcast %cst_10 : f32 to vector<8x128xf32>
    %19 = arith.select %16, %17, %18 : vector<8x128xi1>, vector<8x128xf32>
    %cst_11 = arith.constant 0.000000e+00 : f32
    %20 = vector.broadcast %cst_11 : f32 to vector<8x32xf32>
    %cst_12 = arith.constant 0.000000e+00 : f32
    %21 = vector.broadcast %cst_12 : f32 to vector<8x32xf32>
    %c0_i32 = arith.constant 0 : i32
    %c8_i32 = arith.constant 8 : i32
    %22 = arith.muli %c0_i32, %c8_i32 : i32
    %23 = tpu.assume_multiple %22, 8 : i32
    %24 = arith.index_cast %23 : i32 to index
    %c0_13 = arith.constant 0 : index
    %25 = vector.load %arg8[%24, %c0_13] : memref<64x128xf32, #tpu.memory_space<vmem>>, vector<8x128xf32>
    %cst_14 = arith.constant dense<0.000000e+00> : vector<8x128xf32>
    %26 = tpu.matmul %20, %10, %cst_14 {dimension_numbers = #tpu.dot_dimension_numbers<[1], [0], [0], [1], [0, 0, 1, 1], [], []>} : vector<8x32xf32>, vector<32x128xf32>, vector<8x128xf32> -> vector<8x128xf32>
    %27 = arith.addf %25, %26 : vector<8x128xf32>
    %28 = arith.mulf %27, %19 : vector<8x128xf32>
    %29 = arith.negf %28 : vector<8x128xf32>
    %30 = math.exp %29 : vector<8x128xf32>
    %cst_15 = arith.constant 1.000000e+00 : f32
    %31 = vector.broadcast %cst_15 : f32 to vector<8x128xf32>
    %32 = arith.addf %31, %30 : vector<8x128xf32>
    %33 = arith.divf %31, %32 : vector<8x128xf32>
    %34 = vector.extract_strided_slice %33 {offsets = [0, 0], sizes = [8, 32], strides = [1, 1]} : vector<8x128xf32> to vector<8x32xf32>
    %35 = vector.extract_strided_slice %33 {offsets = [0, 32], sizes = [8, 32], strides = [1, 1]} : vector<8x128xf32> to vector<8x32xf32>
    %36 = vector.extract_strided_slice %33 {offsets = [0, 64], sizes = [8, 32], strides = [1, 1]} : vector<8x128xf32> to vector<8x32xf32>
    %cst_16 = arith.constant 2.000000e+00 : f32
    %37 = vector.broadcast %cst_16 : f32 to vector<8x32xf32>
    %38 = arith.mulf %37, %36 : vector<8x32xf32>
    %cst_17 = arith.constant 1.000000e+00 : f32
    %39 = vector.broadcast %cst_17 : f32 to vector<8x32xf32>
    %40 = arith.subf %38, %39 : vector<8x32xf32>
    %41 = vector.extract_strided_slice %33 {offsets = [0, 96], sizes = [8, 32], strides = [1, 1]} : vector<8x128xf32> to vector<8x32xf32>
    %42 = arith.mulf %35, %21 : vector<8x32xf32>
    %43 = arith.mulf %34, %40 : vector<8x32xf32>
    %44 = arith.addf %42, %43 : vector<8x32xf32>
    %45 = math.tanh %44 : vector<8x32xf32>
    %46 = arith.mulf %41, %45 : vector<8x32xf32>
    %47 = vector.broadcast %c0_i32 : i32 to vector<8x1xi32>
    %48 = arith.cmpi slt, %47, %9 : vector<8x1xi32>
    %49 = vector.shape_cast %48 : vector<8x1xi1> to vector<8x1xi1>
    %50 = vector.broadcast %49 : vector<8x1xi1> to vector<8x32xi1>
    %51 = arith.select %50, %46, %20 : vector<8x32xi1>, vector<8x32xf32>
    %52 = vector.shape_cast %48 : vector<8x1xi1> to vector<8x1xi1>
    %53 = vector.broadcast %52 : vector<8x1xi1> to vector<8x32xi1>
    %54 = arith.select %53, %44, %21 : vector<8x32xi1>, vector<8x32xf32>
    %c1_i32 = arith.constant 1 : i32
    %c8_i32_18 = arith.constant 8 : i32
    %55 = arith.muli %c1_i32, %c8_i32_18 : i32
    %56 = tpu.assume_multiple %55, 8 : i32
    %57 = arith.index_cast %56 : i32 to index
    %c0_19 = arith.constant 0 : index
    %58 = vector.load %arg8[%57, %c0_19] : memref<64x128xf32, #tpu.memory_space<vmem>>, vector<8x128xf32>
    %cst_20 = arith.constant dense<0.000000e+00> : vector<8x128xf32>
    %59 = tpu.matmul %51, %10, %cst_20 {dimension_numbers = #tpu.dot_dimension_numbers<[1], [0], [0], [1], [0, 0, 1, 1], [], []>} : vector<8x32xf32>, vector<32x128xf32>, vector<8x128xf32> -> vector<8x128xf32>
    %60 = arith.addf %58, %59 : vector<8x128xf32>
    %61 = arith.mulf %60, %19 : vector<8x128xf32>
    %62 = arith.negf %61 : vector<8x128xf32>
    %63 = math.exp %62 : vector<8x128xf32>
    %cst_21 = arith.constant 1.000000e+00 : f32
    %64 = vector.broadcast %cst_21 : f32 to vector<8x128xf32>
    %65 = arith.addf %64, %63 : vector<8x128xf32>
    %66 = arith.divf %64, %65 : vector<8x128xf32>
    %67 = vector.extract_strided_slice %66 {offsets = [0, 0], sizes = [8, 32], strides = [1, 1]} : vector<8x128xf32> to vector<8x32xf32>
    %68 = vector.extract_strided_slice %66 {offsets = [0, 32], sizes = [8, 32], strides = [1, 1]} : vector<8x128xf32> to vector<8x32xf32>
    %69 = vector.extract_strided_slice %66 {offsets = [0, 64], sizes = [8, 32], strides = [1, 1]} : vector<8x128xf32> to vector<8x32xf32>
    %cst_22 = arith.constant 2.000000e+00 : f32
    %70 = vector.broadcast %cst_22 : f32 to vector<8x32xf32>
    %71 = arith.mulf %70, %69 : vector<8x32xf32>
    %cst_23 = arith.constant 1.000000e+00 : f32
    %72 = vector.broadcast %cst_23 : f32 to vector<8x32xf32>
    %73 = arith.subf %71, %72 : vector<8x32xf32>
    %74 = vector.extract_strided_slice %66 {offsets = [0, 96], sizes = [8, 32], strides = [1, 1]} : vector<8x128xf32> to vector<8x32xf32>
    %75 = arith.mulf %68, %54 : vector<8x32xf32>
    %76 = arith.mulf %67, %73 : vector<8x32xf32>
    %77 = arith.addf %75, %76 : vector<8x32xf32>
    %78 = math.tanh %77 : vector<8x32xf32>
    %79 = arith.mulf %74, %78 : vector<8x32xf32>
    %80 = vector.broadcast %c1_i32 : i32 to vector<8x1xi32>
    %81 = arith.cmpi slt, %80, %9 : vector<8x1xi32>
    %82 = vector.shape_cast %81 : vector<8x1xi1> to vector<8x1xi1>
    %83 = vector.broadcast %82 : vector<8x1xi1> to vector<8x32xi1>
    %84 = arith.select %83, %79, %51 : vector<8x32xi1>, vector<8x32xf32>
    %85 = vector.shape_cast %81 : vector<8x1xi1> to vector<8x1xi1>
    %86 = vector.broadcast %85 : vector<8x1xi1> to vector<8x32xi1>
    %87 = arith.select %86, %77, %54 : vector<8x32xi1>, vector<8x32xf32>
    %c2_i32 = arith.constant 2 : i32
    %c8_i32_24 = arith.constant 8 : i32
    %88 = arith.muli %c2_i32, %c8_i32_24 : i32
    %89 = tpu.assume_multiple %88, 8 : i32
    %90 = arith.index_cast %89 : i32 to index
    %c0_25 = arith.constant 0 : index
    %91 = vector.load %arg8[%90, %c0_25] : memref<64x128xf32, #tpu.memory_space<vmem>>, vector<8x128xf32>
    %cst_26 = arith.constant dense<0.000000e+00> : vector<8x128xf32>
    %92 = tpu.matmul %84, %10, %cst_26 {dimension_numbers = #tpu.dot_dimension_numbers<[1], [0], [0], [1], [0, 0, 1, 1], [], []>} : vector<8x32xf32>, vector<32x128xf32>, vector<8x128xf32> -> vector<8x128xf32>
    %93 = arith.addf %91, %92 : vector<8x128xf32>
    %94 = arith.mulf %93, %19 : vector<8x128xf32>
    %95 = arith.negf %94 : vector<8x128xf32>
    %96 = math.exp %95 : vector<8x128xf32>
    %cst_27 = arith.constant 1.000000e+00 : f32
    %97 = vector.broadcast %cst_27 : f32 to vector<8x128xf32>
    %98 = arith.addf %97, %96 : vector<8x128xf32>
    %99 = arith.divf %97, %98 : vector<8x128xf32>
    %100 = vector.extract_strided_slice %99 {offsets = [0, 0], sizes = [8, 32], strides = [1, 1]} : vector<8x128xf32> to vector<8x32xf32>
    %101 = vector.extract_strided_slice %99 {offsets = [0, 32], sizes = [8, 32], strides = [1, 1]} : vector<8x128xf32> to vector<8x32xf32>
    %102 = vector.extract_strided_slice %99 {offsets = [0, 64], sizes = [8, 32], strides = [1, 1]} : vector<8x128xf32> to vector<8x32xf32>
    %cst_28 = arith.constant 2.000000e+00 : f32
    %103 = vector.broadcast %cst_28 : f32 to vector<8x32xf32>
    %104 = arith.mulf %103, %102 : vector<8x32xf32>
    %cst_29 = arith.constant 1.000000e+00 : f32
    %105 = vector.broadcast %cst_29 : f32 to vector<8x32xf32>
    %106 = arith.subf %104, %105 : vector<8x32xf32>
    %107 = vector.extract_strided_slice %99 {offsets = [0, 96], sizes = [8, 32], strides = [1, 1]} : vector<8x128xf32> to vector<8x32xf32>
    %108 = arith.mulf %101, %87 : vector<8x32xf32>
    %109 = arith.mulf %100, %106 : vector<8x32xf32>
    %110 = arith.addf %108, %109 : vector<8x32xf32>
    %111 = math.tanh %110 : vector<8x32xf32>
    %112 = arith.mulf %107, %111 : vector<8x32xf32>
    %113 = vector.broadcast %c2_i32 : i32 to vector<8x1xi32>
    %114 = arith.cmpi slt, %113, %9 : vector<8x1xi32>
    %115 = vector.shape_cast %114 : vector<8x1xi1> to vector<8x1xi1>
    %116 = vector.broadcast %115 : vector<8x1xi1> to vector<8x32xi1>
    %117 = arith.select %116, %112, %84 : vector<8x32xi1>, vector<8x32xf32>
    %118 = vector.shape_cast %114 : vector<8x1xi1> to vector<8x1xi1>
    %119 = vector.broadcast %118 : vector<8x1xi1> to vector<8x32xi1>
    %120 = arith.select %119, %110, %87 : vector<8x32xi1>, vector<8x32xf32>
    %c3_i32 = arith.constant 3 : i32
    %c8_i32_30 = arith.constant 8 : i32
    %121 = arith.muli %c3_i32, %c8_i32_30 : i32
    %122 = tpu.assume_multiple %121, 8 : i32
    %123 = arith.index_cast %122 : i32 to index
    %c0_31 = arith.constant 0 : index
    %124 = vector.load %arg8[%123, %c0_31] : memref<64x128xf32, #tpu.memory_space<vmem>>, vector<8x128xf32>
    %cst_32 = arith.constant dense<0.000000e+00> : vector<8x128xf32>
    %125 = tpu.matmul %117, %10, %cst_32 {dimension_numbers = #tpu.dot_dimension_numbers<[1], [0], [0], [1], [0, 0, 1, 1], [], []>} : vector<8x32xf32>, vector<32x128xf32>, vector<8x128xf32> -> vector<8x128xf32>
    %126 = arith.addf %124, %125 : vector<8x128xf32>
    %127 = arith.mulf %126, %19 : vector<8x128xf32>
    %128 = arith.negf %127 : vector<8x128xf32>
    %129 = math.exp %128 : vector<8x128xf32>
    %cst_33 = arith.constant 1.000000e+00 : f32
    %130 = vector.broadcast %cst_33 : f32 to vector<8x128xf32>
    %131 = arith.addf %130, %129 : vector<8x128xf32>
    %132 = arith.divf %130, %131 : vector<8x128xf32>
    %133 = vector.extract_strided_slice %132 {offsets = [0, 0], sizes = [8, 32], strides = [1, 1]} : vector<8x128xf32> to vector<8x32xf32>
    %134 = vector.extract_strided_slice %132 {offsets = [0, 32], sizes = [8, 32], strides = [1, 1]} : vector<8x128xf32> to vector<8x32xf32>
    %135 = vector.extract_strided_slice %132 {offsets = [0, 64], sizes = [8, 32], strides = [1, 1]} : vector<8x128xf32> to vector<8x32xf32>
    %cst_34 = arith.constant 2.000000e+00 : f32
    %136 = vector.broadcast %cst_34 : f32 to vector<8x32xf32>
    %137 = arith.mulf %136, %135 : vector<8x32xf32>
    %cst_35 = arith.constant 1.000000e+00 : f32
    %138 = vector.broadcast %cst_35 : f32 to vector<8x32xf32>
    %139 = arith.subf %137, %138 : vector<8x32xf32>
    %140 = vector.extract_strided_slice %132 {offsets = [0, 96], sizes = [8, 32], strides = [1, 1]} : vector<8x128xf32> to vector<8x32xf32>
    %141 = arith.mulf %134, %120 : vector<8x32xf32>
    %142 = arith.mulf %133, %139 : vector<8x32xf32>
    %143 = arith.addf %141, %142 : vector<8x32xf32>
    %144 = math.tanh %143 : vector<8x32xf32>
    %145 = arith.mulf %140, %144 : vector<8x32xf32>
    %146 = vector.broadcast %c3_i32 : i32 to vector<8x1xi32>
    %147 = arith.cmpi slt, %146, %9 : vector<8x1xi32>
    %148 = vector.shape_cast %147 : vector<8x1xi1> to vector<8x1xi1>
    %149 = vector.broadcast %148 : vector<8x1xi1> to vector<8x32xi1>
    %150 = arith.select %149, %145, %117 : vector<8x32xi1>, vector<8x32xf32>
    %151 = vector.shape_cast %147 : vector<8x1xi1> to vector<8x1xi1>
    %152 = vector.broadcast %151 : vector<8x1xi1> to vector<8x32xi1>
    %153 = arith.select %152, %143, %120 : vector<8x32xi1>, vector<8x32xf32>
    %c4_i32 = arith.constant 4 : i32
    %c8_i32_36 = arith.constant 8 : i32
    %154 = arith.muli %c4_i32, %c8_i32_36 : i32
    %155 = tpu.assume_multiple %154, 8 : i32
    %156 = arith.index_cast %155 : i32 to index
    %c0_37 = arith.constant 0 : index
    %157 = vector.load %arg8[%156, %c0_37] : memref<64x128xf32, #tpu.memory_space<vmem>>, vector<8x128xf32>
    %cst_38 = arith.constant dense<0.000000e+00> : vector<8x128xf32>
    %158 = tpu.matmul %150, %10, %cst_38 {dimension_numbers = #tpu.dot_dimension_numbers<[1], [0], [0], [1], [0, 0, 1, 1], [], []>} : vector<8x32xf32>, vector<32x128xf32>, vector<8x128xf32> -> vector<8x128xf32>
    %159 = arith.addf %157, %158 : vector<8x128xf32>
    %160 = arith.mulf %159, %19 : vector<8x128xf32>
    %161 = arith.negf %160 : vector<8x128xf32>
    %162 = math.exp %161 : vector<8x128xf32>
    %cst_39 = arith.constant 1.000000e+00 : f32
    %163 = vector.broadcast %cst_39 : f32 to vector<8x128xf32>
    %164 = arith.addf %163, %162 : vector<8x128xf32>
    %165 = arith.divf %163, %164 : vector<8x128xf32>
    %166 = vector.extract_strided_slice %165 {offsets = [0, 0], sizes = [8, 32], strides = [1, 1]} : vector<8x128xf32> to vector<8x32xf32>
    %167 = vector.extract_strided_slice %165 {offsets = [0, 32], sizes = [8, 32], strides = [1, 1]} : vector<8x128xf32> to vector<8x32xf32>
    %168 = vector.extract_strided_slice %165 {offsets = [0, 64], sizes = [8, 32], strides = [1, 1]} : vector<8x128xf32> to vector<8x32xf32>
    %cst_40 = arith.constant 2.000000e+00 : f32
    %169 = vector.broadcast %cst_40 : f32 to vector<8x32xf32>
    %170 = arith.mulf %169, %168 : vector<8x32xf32>
    %cst_41 = arith.constant 1.000000e+00 : f32
    %171 = vector.broadcast %cst_41 : f32 to vector<8x32xf32>
    %172 = arith.subf %170, %171 : vector<8x32xf32>
    %173 = vector.extract_strided_slice %165 {offsets = [0, 96], sizes = [8, 32], strides = [1, 1]} : vector<8x128xf32> to vector<8x32xf32>
    %174 = arith.mulf %167, %153 : vector<8x32xf32>
    %175 = arith.mulf %166, %172 : vector<8x32xf32>
    %176 = arith.addf %174, %175 : vector<8x32xf32>
    %177 = math.tanh %176 : vector<8x32xf32>
    %178 = arith.mulf %173, %177 : vector<8x32xf32>
    %179 = vector.broadcast %c4_i32 : i32 to vector<8x1xi32>
    %180 = arith.cmpi slt, %179, %9 : vector<8x1xi32>
    %181 = vector.shape_cast %180 : vector<8x1xi1> to vector<8x1xi1>
    %182 = vector.broadcast %181 : vector<8x1xi1> to vector<8x32xi1>
    %183 = arith.select %182, %178, %150 : vector<8x32xi1>, vector<8x32xf32>
    %184 = vector.shape_cast %180 : vector<8x1xi1> to vector<8x1xi1>
    %185 = vector.broadcast %184 : vector<8x1xi1> to vector<8x32xi1>
    %186 = arith.select %185, %176, %153 : vector<8x32xi1>, vector<8x32xf32>
    %c5_i32 = arith.constant 5 : i32
    %c8_i32_42 = arith.constant 8 : i32
    %187 = arith.muli %c5_i32, %c8_i32_42 : i32
    %188 = tpu.assume_multiple %187, 8 : i32
    %189 = arith.index_cast %188 : i32 to index
    %c0_43 = arith.constant 0 : index
    %190 = vector.load %arg8[%189, %c0_43] : memref<64x128xf32, #tpu.memory_space<vmem>>, vector<8x128xf32>
    %cst_44 = arith.constant dense<0.000000e+00> : vector<8x128xf32>
    %191 = tpu.matmul %183, %10, %cst_44 {dimension_numbers = #tpu.dot_dimension_numbers<[1], [0], [0], [1], [0, 0, 1, 1], [], []>} : vector<8x32xf32>, vector<32x128xf32>, vector<8x128xf32> -> vector<8x128xf32>
    %192 = arith.addf %190, %191 : vector<8x128xf32>
    %193 = arith.mulf %192, %19 : vector<8x128xf32>
    %194 = arith.negf %193 : vector<8x128xf32>
    %195 = math.exp %194 : vector<8x128xf32>
    %cst_45 = arith.constant 1.000000e+00 : f32
    %196 = vector.broadcast %cst_45 : f32 to vector<8x128xf32>
    %197 = arith.addf %196, %195 : vector<8x128xf32>
    %198 = arith.divf %196, %197 : vector<8x128xf32>
    %199 = vector.extract_strided_slice %198 {offsets = [0, 0], sizes = [8, 32], strides = [1, 1]} : vector<8x128xf32> to vector<8x32xf32>
    %200 = vector.extract_strided_slice %198 {offsets = [0, 32], sizes = [8, 32], strides = [1, 1]} : vector<8x128xf32> to vector<8x32xf32>
    %201 = vector.extract_strided_slice %198 {offsets = [0, 64], sizes = [8, 32], strides = [1, 1]} : vector<8x128xf32> to vector<8x32xf32>
    %cst_46 = arith.constant 2.000000e+00 : f32
    %202 = vector.broadcast %cst_46 : f32 to vector<8x32xf32>
    %203 = arith.mulf %202, %201 : vector<8x32xf32>
    %cst_47 = arith.constant 1.000000e+00 : f32
    %204 = vector.broadcast %cst_47 : f32 to vector<8x32xf32>
    %205 = arith.subf %203, %204 : vector<8x32xf32>
    %206 = vector.extract_strided_slice %198 {offsets = [0, 96], sizes = [8, 32], strides = [1, 1]} : vector<8x128xf32> to vector<8x32xf32>
    %207 = arith.mulf %200, %186 : vector<8x32xf32>
    %208 = arith.mulf %199, %205 : vector<8x32xf32>
    %209 = arith.addf %207, %208 : vector<8x32xf32>
    %210 = math.tanh %209 : vector<8x32xf32>
    %211 = arith.mulf %206, %210 : vector<8x32xf32>
    %212 = vector.broadcast %c5_i32 : i32 to vector<8x1xi32>
    %213 = arith.cmpi slt, %212, %9 : vector<8x1xi32>
    %214 = vector.shape_cast %213 : vector<8x1xi1> to vector<8x1xi1>
    %215 = vector.broadcast %214 : vector<8x1xi1> to vector<8x32xi1>
    %216 = arith.select %215, %211, %183 : vector<8x32xi1>, vector<8x32xf32>
    %217 = vector.shape_cast %213 : vector<8x1xi1> to vector<8x1xi1>
    %218 = vector.broadcast %217 : vector<8x1xi1> to vector<8x32xi1>
    %219 = arith.select %218, %209, %186 : vector<8x32xi1>, vector<8x32xf32>
    %c6_i32 = arith.constant 6 : i32
    %c8_i32_48 = arith.constant 8 : i32
    %220 = arith.muli %c6_i32, %c8_i32_48 : i32
    %221 = tpu.assume_multiple %220, 8 : i32
    %222 = arith.index_cast %221 : i32 to index
    %c0_49 = arith.constant 0 : index
    %223 = vector.load %arg8[%222, %c0_49] : memref<64x128xf32, #tpu.memory_space<vmem>>, vector<8x128xf32>
    %cst_50 = arith.constant dense<0.000000e+00> : vector<8x128xf32>
    %224 = tpu.matmul %216, %10, %cst_50 {dimension_numbers = #tpu.dot_dimension_numbers<[1], [0], [0], [1], [0, 0, 1, 1], [], []>} : vector<8x32xf32>, vector<32x128xf32>, vector<8x128xf32> -> vector<8x128xf32>
    %225 = arith.addf %223, %224 : vector<8x128xf32>
    %226 = arith.mulf %225, %19 : vector<8x128xf32>
    %227 = arith.negf %226 : vector<8x128xf32>
    %228 = math.exp %227 : vector<8x128xf32>
    %cst_51 = arith.constant 1.000000e+00 : f32
    %229 = vector.broadcast %cst_51 : f32 to vector<8x128xf32>
    %230 = arith.addf %229, %228 : vector<8x128xf32>
    %231 = arith.divf %229, %230 : vector<8x128xf32>
    %232 = vector.extract_strided_slice %231 {offsets = [0, 0], sizes = [8, 32], strides = [1, 1]} : vector<8x128xf32> to vector<8x32xf32>
    %233 = vector.extract_strided_slice %231 {offsets = [0, 32], sizes = [8, 32], strides = [1, 1]} : vector<8x128xf32> to vector<8x32xf32>
    %234 = vector.extract_strided_slice %231 {offsets = [0, 64], sizes = [8, 32], strides = [1, 1]} : vector<8x128xf32> to vector<8x32xf32>
    %cst_52 = arith.constant 2.000000e+00 : f32
    %235 = vector.broadcast %cst_52 : f32 to vector<8x32xf32>
    %236 = arith.mulf %235, %234 : vector<8x32xf32>
    %cst_53 = arith.constant 1.000000e+00 : f32
    %237 = vector.broadcast %cst_53 : f32 to vector<8x32xf32>
    %238 = arith.subf %236, %237 : vector<8x32xf32>
    %239 = vector.extract_strided_slice %231 {offsets = [0, 96], sizes = [8, 32], strides = [1, 1]} : vector<8x128xf32> to vector<8x32xf32>
    %240 = arith.mulf %233, %219 : vector<8x32xf32>
    %241 = arith.mulf %232, %238 : vector<8x32xf32>
    %242 = arith.addf %240, %241 : vector<8x32xf32>
    %243 = math.tanh %242 : vector<8x32xf32>
    %244 = arith.mulf %239, %243 : vector<8x32xf32>
    %245 = vector.broadcast %c6_i32 : i32 to vector<8x1xi32>
    %246 = arith.cmpi slt, %245, %9 : vector<8x1xi32>
    %247 = vector.shape_cast %246 : vector<8x1xi1> to vector<8x1xi1>
    %248 = vector.broadcast %247 : vector<8x1xi1> to vector<8x32xi1>
    %249 = arith.select %248, %244, %216 : vector<8x32xi1>, vector<8x32xf32>
    %250 = vector.shape_cast %246 : vector<8x1xi1> to vector<8x1xi1>
    %251 = vector.broadcast %250 : vector<8x1xi1> to vector<8x32xi1>
    %252 = arith.select %251, %242, %219 : vector<8x32xi1>, vector<8x32xf32>
    %c7_i32 = arith.constant 7 : i32
    %c8_i32_54 = arith.constant 8 : i32
    %253 = arith.muli %c7_i32, %c8_i32_54 : i32
    %254 = tpu.assume_multiple %253, 8 : i32
    %255 = arith.index_cast %254 : i32 to index
    %c0_55 = arith.constant 0 : index
    %256 = vector.load %arg8[%255, %c0_55] : memref<64x128xf32, #tpu.memory_space<vmem>>, vector<8x128xf32>
    %cst_56 = arith.constant dense<0.000000e+00> : vector<8x128xf32>
    %257 = tpu.matmul %249, %10, %cst_56 {dimension_numbers = #tpu.dot_dimension_numbers<[1], [0], [0], [1], [0, 0, 1, 1], [], []>} : vector<8x32xf32>, vector<32x128xf32>, vector<8x128xf32> -> vector<8x128xf32>
    %258 = arith.addf %256, %257 : vector<8x128xf32>
    %259 = arith.mulf %258, %19 : vector<8x128xf32>
    %260 = arith.negf %259 : vector<8x128xf32>
    %261 = math.exp %260 : vector<8x128xf32>
    %cst_57 = arith.constant 1.000000e+00 : f32
    %262 = vector.broadcast %cst_57 : f32 to vector<8x128xf32>
    %263 = arith.addf %262, %261 : vector<8x128xf32>
    %264 = arith.divf %262, %263 : vector<8x128xf32>
    %265 = vector.extract_strided_slice %264 {offsets = [0, 0], sizes = [8, 32], strides = [1, 1]} : vector<8x128xf32> to vector<8x32xf32>
    %266 = vector.extract_strided_slice %264 {offsets = [0, 32], sizes = [8, 32], strides = [1, 1]} : vector<8x128xf32> to vector<8x32xf32>
    %267 = vector.extract_strided_slice %264 {offsets = [0, 64], sizes = [8, 32], strides = [1, 1]} : vector<8x128xf32> to vector<8x32xf32>
    %cst_58 = arith.constant 2.000000e+00 : f32
    %268 = vector.broadcast %cst_58 : f32 to vector<8x32xf32>
    %269 = arith.mulf %268, %267 : vector<8x32xf32>
    %cst_59 = arith.constant 1.000000e+00 : f32
    %270 = vector.broadcast %cst_59 : f32 to vector<8x32xf32>
    %271 = arith.subf %269, %270 : vector<8x32xf32>
    %272 = vector.extract_strided_slice %264 {offsets = [0, 96], sizes = [8, 32], strides = [1, 1]} : vector<8x128xf32> to vector<8x32xf32>
    %273 = arith.mulf %266, %252 : vector<8x32xf32>
    %274 = arith.mulf %265, %271 : vector<8x32xf32>
    %275 = arith.addf %273, %274 : vector<8x32xf32>
    %276 = math.tanh %275 : vector<8x32xf32>
    %277 = arith.mulf %272, %276 : vector<8x32xf32>
    %278 = vector.broadcast %c7_i32 : i32 to vector<8x1xi32>
    %279 = arith.cmpi slt, %278, %9 : vector<8x1xi32>
    %280 = vector.shape_cast %279 : vector<8x1xi1> to vector<8x1xi1>
    %281 = vector.broadcast %280 : vector<8x1xi1> to vector<8x32xi1>
    %282 = arith.select %281, %277, %249 : vector<8x32xi1>, vector<8x32xf32>
    %283 = vector.shape_cast %279 : vector<8x1xi1> to vector<8x1xi1>
    %284 = vector.broadcast %283 : vector<8x1xi1> to vector<8x32xi1>
    %285 = arith.select %284, %275, %252 : vector<8x32xi1>, vector<8x32xf32>
    %c8_i32_60 = arith.constant 8 : i32
    %c0_61 = arith.constant 0 : index
    %c0_62 = arith.constant 0 : index
    %286 = vector.load %arg5[%c0_61, %c0_62] : memref<32x128xf32, #tpu.memory_space<vmem>>, vector<32x128xf32>
    %cst_63 = arith.constant dense<0.000000e+00> : vector<8x128xf32>
    %287 = tpu.matmul %282, %286, %cst_63 {dimension_numbers = #tpu.dot_dimension_numbers<[1], [0], [0], [1], [0, 0, 1, 1], [], []>} : vector<8x32xf32>, vector<32x128xf32>, vector<8x128xf32> -> vector<8x128xf32>
    %c0_64 = arith.constant 0 : index
    %c0_65 = arith.constant 0 : index
    %288 = vector.load %arg6[%c0_64, %c0_65] : memref<1x128xf32, #tpu.memory_space<vmem>>, vector<1x128xf32>
    %289 = vector.broadcast %288 : vector<1x128xf32> to vector<8x128xf32>
    %290 = arith.addf %287, %289 : vector<8x128xf32>
    %c0_66 = arith.constant 0 : index
    %c0_67 = arith.constant 0 : index
    %291 = vector.load %arg7[%c0_66, %c0_67] : memref<8x128xf32, #tpu.memory_space<vmem>>, vector<8x128xf32>
    tpu.vector_store %arg7[%c0_66, %c0_67], %290 {strides = array<i32>} : memref<8x128xf32, #tpu.memory_space<vmem>>, vector<8x128xf32>,
    return
  }
  func.func @transform_0(%arg0: i32) -> (i32, i32) {
    %c0_i32 = arith.constant 0 : i32
    %c0_i32_0 = arith.constant 0 : i32
    %c0_i32_1 = arith.constant 0 : i32
    return %c0_i32, %c0_i32_0 : i32, i32
  }
  func.func @transform_1(%arg0: i32) -> (i32, i32) {
    %c0_i32 = arith.constant 0 : i32
    %c0_i32_0 = arith.constant 0 : i32
    %c0_i32_1 = arith.constant 0 : i32
    return %c0_i32, %c0_i32_0 : i32, i32
  }
  func.func @transform_2(%arg0: i32) -> (i32, i32) {
    %c0_i32 = arith.constant 0 : i32
    %c0_i32_0 = arith.constant 0 : i32
    %c0_i32_1 = arith.constant 0 : i32
    return %c0_i32, %c0_i32_0 : i32, i32
  }
  func.func @transform_3(%arg0: i32) -> (i32, i32) {
    %c0_i32 = arith.constant 0 : i32
    %c0_i32_0 = arith.constant 0 : i32
    %c0_i32_1 = arith.constant 0 : i32
    return %c0_i32, %c0_i32_0 : i32, i32
  }
  func.func @transform_4(%arg0: i32) -> (i32, i32) {
    %c0_i32 = arith.constant 0 : i32
    %c0_i32_0 = arith.constant 0 : i32
    %c0_i32_1 = arith.constant 0 : i32
    return %c0_i32, %c0_i32_0 : i32, i32
  }
  func.func @transform_5(%arg0: i32) -> (i32, i32) {
    %c0_i32 = arith.constant 0 : i32
    %c0_i32_0 = arith.constant 0 : i32
    %c0_i32_1 = arith.constant 0 : i32
    return %c0_i32, %c0_i32_0 : i32, i32
  }
  func.func @transform_6(%arg0: i32) -> (i32, i32) {
    %c0_i32 = arith.constant 0 : i32
    %c0_i32_0 = arith.constant 0 : i32
    %c0_i32_1 = arith.constant 0 : i32
    return %c0_i32, %c0_i32_0 : i32, i32
  }
}

</mosaic_0001>

<bundles_post_ra>
// kernel: tpu_custom_call.1
= control target key start
LH: loop header
LB: loop body
LE: loop exit
PB: predicated region body
PF: predicated region fallthrough
CT: control target
= control target key end

     0   :  { %11 = vsyncpa [#allocation4], 0  ;;  %s1894_s0 = inlined_call_operand.vmem [shape: s32[64,1], index: 0, kind: input, shape index: {}]   ;;  %s1895_s1 = inlined_call_operand.vmem [shape: s32[8,1], index: 1, kind: input, shape index: {}]   ;;  %s1896_s2 = inlined_call_operand.hbm [shape: f32[128,128], index: 2, kind: input, shape index: {}]   ;;  %s1897_s3 = inlined_call_operand.vmem [shape: f32[32,128], index: 3, kind: input, shape index: {}]   ;;  %s1898_s4 = inlined_call_operand.vmem [shape: f32[32,128], index: 4, kind: input, shape index: {}]   ;;  %s1899_s5 = inlined_call_operand.vmem [shape: f32[1,128], index: 5, kind: input, shape index: {}]   ;;  %s1900_s6 = inlined_call_operand.hbm [shape: f32[8,128], index: 6, kind: output, shape index: {}]  }
   0x1   :  { %12 = vsyncpa [#allocation5], 0  ;;  %s1586_s21 = smov [#allocation3]  }
   0x2   :  { %s22_s22 = sshll.u32 %s1586_s21, 4  ;;  %s23_s22 = int_to_ptr.vmem [resolvable:$true] %s22_s22 }
   0x3   :  { %s1550_s23 = scalar_lea.vmem %s23_s22, 2048  ;;  %p1555_p1 = scmp.lt.s32.totalorder %s23_s22, %s23_s22 }
   0x4   :  { %p1551_p0 = scmp.ne.s32.totalorder %s23_s22, %s1550_s23  ;;  %p1556_p2 = scmp.lt.s32.totalorder %s1550_s23, %s1550_s23 }
   0x6   :  { %p1557_p3 = por %p1556_p2, %p1555_p1 }
   0x8   :  { %p1558_p4 = pnand %p1557_p3, %p1551_p0 }
   0xa   :  { %1561 = shalt.err (!%p1558_p4)
}
   0xb   :  { %s1587_s24 = smov 128   ;;  %s1588_s25 = smov 8  }
   0xc   :  { %28 = dma.hbm_to_vmem [thread:$0]  %s1896_s2, 2048, %s23_s22, [#allocation4], %s1587_s24, %s1587_s24, %s1588_s25  }
   0xd   :  { %1582 = dma.done.wait [#allocation4], 2048  }
   0xe   :  { %1583 = vsyncadd [#allocation4], 4294965248  ;;  %v1589_v0 = vmov 0   ;;  %v1590_v1 = vmov 0.0   ;;  %v38_v2 = vld [vmem:[%s1894_s0] sm:$0xff]  ;;  %v111_v4 = vld [vmem:[#allocation3 + $0x78] sm:$0xff]  ;;  %v46_v26 = vlaneseq }
   0xf   :  { %1492 = vset.pattern.permute.xlu0 %v1589_v0  ;;  %1383 = vmatprep.subr.mxu1 %v1590_v1  ;;  %v1643_v3 = vld [vmem:[%s1895_s1] sm:$0xff]  ;;  %v110_v5 = vld [vmem:[#allocation3 + $0x70] sm:$0xff]  ;;  %vm1591_vm0 = vmmov 0   ;;  %v39_v6 = vld [vmem:[%s1894_s0 + $0x8] sm:$0xff]  ;;  %v1592_v29 = vmov 1.0   ;;  %s1594_s16 = smov 32  }
  0x10   :  { %1493 = vset.pattern.permute.xlu1 %v1589_v0  ;;  %49 = vperm.xlu0 %1492, %v38_v2   ;;  %vm336_vm1 = vcmp.gt.s32.totalorder %v1643_v3, 0  ;;  %v109_v7 = vld [vmem:[#allocation3 + $0x68] sm:$0xff]  ;;  %v108_v8 = vld [vmem:[#allocation3 + $0x60] sm:$0xff]  ;;  %v1654_v9 = vld [vmem:[%s1897_s3 + $0x18] sm:$0xff]  ;;  %v1692_v27 = vand.u32 127, %v46_v26  ;;  %vm235_vm8 = vcmask 261120  }
  0x11   :  { %1391 = vmatprep.mubr.msk.f32.mxu1 %vm1591_vm0, %v1590_v1  ;;  %1339 = vmatprep.subr.mxu0 %v111_v4  ;;  %v337_v10 = vsel %vm336_vm1, 1, %v1589_v0  ;;  %v1661_v11 = vld [vmem:[%s1897_s3 + $0x10] sm:$0xff]  ;;  %v107_v12 = vld [vmem:[#allocation3 + $0x58] sm:$0xff]  ;;  %v1668_v13 = vld [vmem:[%s1897_s3 + $0x8] sm:$0xff]  ;;  %vm448_vm9 = vcmp.gt.s32.totalorder %v1643_v3, 1  ;;  %vm560_vm13 = vcmp.gt.s32.totalorder %v1643_v3, 2 }
  0x12   :  { %1340 = vmatpush3.msra.mxu0 %v111_v4  ;;  %1384 = vmatpush3.msra.mxu1 %v1654_v9  ;;  %v106_v14 = vld [vmem:[#allocation3 + $0x50] sm:$0xff]  ;;  %v1674_v15 = vld [vmem:[%s1897_s3] sm:$0xff]  ;;  %v105_v16 = vld [vmem:[#allocation3 + $0x48] sm:$0xff]  ;;  %vm230_vm4 = vcmp.ge.s32.totalorder %v1692_v27, 64  ;;  %vm231_vm5 = vcmp.lt.s32.totalorder %v1692_v27, 96  ;;  %s1593_s3 = smov 64  }
  0x13   :  { %1341 = vmatprep.subr.mxu0 %v110_v5  ;;  %1385 = vmatprep.subr.mxu1 %v1590_v1  ;;  %v104_v17 = vld [vmem:[#allocation3 + $0x40] sm:$0xff]  ;;  %v103_v18 = vld [vmem:[#allocation3 + $0x38] sm:$0xff]  ;;  %v102_v19 = vld [vmem:[#allocation3 + $0x30] sm:$0xff]  ;;  %v449_v4 = vsel %vm448_vm9, 1, %v1589_v0  ;;  %vm672_vm15 = vcmp.gt.s32.totalorder %v1643_v3, 3  ;;  %vm896_vm9 = vcmp.gt.s32.totalorder %v1643_v3, 5 }
  0x14   :  { %52 = vperm.xlu0 %1492, %v39_v6   ;;  %1342 = vmatpush3.msra.mxu0 %v110_v5  ;;  %v101_v20 = vld [vmem:[#allocation3 + $0x28] sm:$0xff]  ;;  %v100_v21 = vld [vmem:[#allocation3 + $0x20] sm:$0xff]  ;;  %v99_v22 = vld [vmem:[#allocation3 + $0x18] sm:$0xff] }
  0x15   :  { %1343 = vmatprep.subr.mxu0 %v109_v7  ;;  %1386 = vmatpush3.msra.mxu1 %v1661_v11  ;;  %v98_v23 = vld [vmem:[#allocation3 + $0x10] sm:$0xff]  ;;  %v97_v24 = vld [vmem:[#allocation3 + $0x8] sm:$0xff]  ;;  %v96_v25 = vld [vmem:[#allocation3] sm:$0xff] }
  0x16   :  { %1344 = vmatpush3.msra.mxu0 %v109_v7  ;;  %1387 = vmatprep.subr.mxu1 %v1590_v1  ;;  %vm232_vm6 = vmand %vm230_vm4, %vm231_vm5  ;;  %v40_v5 = vld [vmem:[%s1894_s0 + $0x10] sm:$0xff]  ;;  %vm784_vm4 = vcmp.gt.s32.totalorder %v1643_v3, 4 }
  0x17   :  { %1345 = vmatprep.subr.mxu0 %v108_v8  ;;  %1388 = vmatpush3.msra.mxu1 %v1668_v13  ;;  %v1709_v35 = vsel %vm232_vm6, 2.0, %v1592_v29 }
  0x18   :  { %339 = vperm.xlu0 %1492, %v337_v10   ;;  %1346 = vmatpush3.msra.mxu0 %v108_v8 }
  0x19   :  { %1347 = vmatprep.subr.mxu0 %v107_v12  ;;  %1389 = vmatprep.subr.mxu1 %v1590_v1 }
  0x1a   :  { %1348 = vmatpush3.msra.mxu0 %v107_v12  ;;  %1390 = vmatpush3.msra.mxu1 %v1674_v15 }
  0x1b   :  { %1349 = vmatprep.subr.mxu0 %v106_v14  ;;  %1392 = vmatmul.mubr.f32.vlgmr.msra.gmra.mxu1 %v1590_v1 }
  0x1c   :  { %1350 = vmatpush3.msra.mxu0 %v106_v14  ;;  %1394 = vmatprep.subr.mxu1 %v1590_v1 }
  0x1d   :  { %1351 = vmatprep.subr.mxu0 %v105_v16  ;;  %1395 = vmatpush3.msra.mxu1 %v1654_v9 }
  0x1e   :  { %1352 = vmatpush3.msra.mxu0 %v105_v16  ;;  %1396 = vmatprep.subr.mxu1 %v1590_v1 }
  0x1f   :  { %1353 = vmatprep.subr.mxu0 %v104_v17  ;;  %1397 = vmatpush3.msra.mxu1 %v1661_v11 }
  0x20   :  { %1354 = vmatpush3.msra.mxu0 %v104_v17  ;;  %1398 = vmatprep.subr.mxu1 %v1590_v1 }
  0x21   :  { %1355 = vmatprep.subr.mxu0 %v103_v18  ;;  %1399 = vmatpush3.msra.mxu1 %v1668_v13 }
  0x22   :  { %1356 = vmatpush3.msra.mxu0 %v103_v18  ;;  %1400 = vmatprep.subr.mxu1 %v1590_v1 }
  0x23   :  { %1357 = vmatprep.subr.mxu0 %v102_v19  ;;  %1401 = vmatpush3.msra.mxu1 %v1674_v15 }
  0x24   :  { %1358 = vmatpush3.msra.mxu0 %v102_v19  ;;  %1402 = vmatprep.mubr.msk.f32.mxu1 %vm1591_vm0, %v1590_v1  ;;  %v41_v19 = vld [vmem:[%s1894_s0 + $0x18] sm:$0xff] }
  0x25   :  { %1359 = vmatprep.subr.mxu0 %v101_v20  ;;  %1405 = vmatprep.subr.mxu1 %v1590_v1 }
  0x26   :  { %1360 = vmatpush3.msra.mxu0 %v101_v20 }
  0x27   :  { %1361 = vmatprep.subr.mxu0 %v100_v21 }
  0x28   :  { %1362 = vmatpush3.msra.mxu0 %v100_v21 }
  0x29   :  { %1363 = vmatprep.subr.mxu0 %v99_v22 }
  0x2a   :  { %1364 = vmatpush3.msra.mxu0 %v99_v22 }
  0x2b   :  { %1365 = vmatprep.subr.mxu0 %v98_v23 }
  0x2c   :  { %1366 = vmatpush3.msra.mxu0 %v98_v23 }
  0x2d   :  { %1367 = vmatprep.subr.mxu0 %v97_v24 }
  0x2e   :  { %1368 = vmatpush3.msra.mxu0 %v97_v24 }
  0x2f   :  { %1369 = vmatprep.subr.mxu0 %v96_v25 }
  0x30   :  { %1370 = vmatpush3.msra.mxu0 %v96_v25 }
  0x31   :  { %1438 = vmatprep.subr.mxu0 %v1590_v1 }
  0x8b   :  { %v50_v28 = vpop.permute.xlu0 %49 }
  0x8c   :  { %vm72_vm2 = vcmp.eq.s32.totalorder %v1692_v27, %v50_v28 }
  0x8d   :  { %1371 = vmatprep.mubr.msk.f32.mxu0 %vm72_vm2, %v1592_v29 }
  0x8f   :  { %v53_v30 = vpop.permute.xlu0 %52 }
  0x90   :  { %vm73_vm3 = vcmp.eq.s32.totalorder %v1692_v27, %v53_v30 }
  0x91   :  { %1372 = vmatmul.mubr.msk.f32.vlgmr.msra.gmra.mxu0 %vm73_vm3, %v1592_v29 }
  0x92   :  { %1439 = vmatpush3.msra.mxu0 %v1654_v9 }
  0x93   :  { %1440 = vmatprep.subr.mxu0 %v1590_v1  ;;  %v340_v50 = vpop.permute.xlu0 %339 }
  0x94   :  { %1441 = vmatpush3.msra.mxu0 %v1661_v11  ;;  %vm341_vm7 = vcmp.eq.s32.totalorder %v340_v50, 1 }
  0x95   :  { %1442 = vmatprep.subr.mxu0 %v1590_v1 }
  0x96   :  { %1443 = vmatpush3.msra.mxu0 %v1668_v13 }
  0x97   :  { %1444 = vmatprep.subr.mxu0 %v1590_v1 }
  0x98   :  { %1445 = vmatpush3.msra.mxu0 %v1674_v15 }
  0x99   :  { %1460 = vmatprep.subr.mxu0 %v1590_v1 }
  0xdb   :  { %v305_v31 = vpop.f32.mrf.mxu1 }
  0xdd   :  { %v1393_v32 = vpop.f32.mrf.mxu1 }
 0x151   :  { %v1373_v33 = vpop.f32.mrf.mxu0 }
 0x153   :  { %v178_v34 = vpop.f32.mrf.mxu0 }
 0x154   :  { %v309_v36 = vadd.f32 %v305_v31, %v178_v34 }
 0x156   :  { %v310_v37 = vmul.f32 %v309_v36, %v1709_v35 }
 0x158   :  { %v1245_v38 = vmul.f32 -1.442695, %v310_v37 }
 0x15a   :  { %1494 = vpow2.f32 %v1245_v38 }
 0x167   :  { %v1495_v39 = vpop.eup %1494 }
 0x168   :  { %v314_v40 = vadd.f32 1.0, %v1495_v39 }
 0x16a   :  { %1496 = vrcp.f32 %v314_v40  ;;  %v561_v40 = vsel %vm560_vm13, 1, %v1589_v0 }
 0x177   :  { %v1497_v41 = vpop.eup %1496 }
 0x178   :  { %v317_v42 = vmul.f32 2.0, %v1497_v41  ;;  %v319_v46 = vmul.f32 0.0, %v1497_v41 }
 0x17a   :  { %v1246_v43 = vadd.f32 -1.0, %v317_v42 }
 0x17c   :  { %321 = vrot.lane.b32.xlu1 %v1246_v43, %s1593_s3 }
 0x1ee   :  { %v322_v44 = vpop.permute.xlu1 %321 }
 0x1ef   :  { %v324_v45 = vmul.f32 %v1497_v41, %v322_v44 }
 0x1f1   :  { %326 = vrot.lane.b32.xlu1 %v324_v45, %s1594_s16 }
 0x263   :  { %v327_v47 = vpop.permute.xlu1 %326 }
 0x264   :  { %v329_v48 = vadd.f32 %v327_v47, %v319_v46 }
 0x266   :  { %1498 = vtanh.f32 %v329_v48  ;;  %v343_v8 = vsel %vm341_vm7, %v329_v48, 0.0 }
 0x273   :  { %v1499_v49 = vpop.eup %1498 }
 0x274   :  { %332 = vrot.lane.b32.xlu1 %v1499_v49, %s1593_s3 }
 0x2e6   :  { %v333_v51 = vpop.permute.xlu1 %332 }
 0x2e7   :  { %v335_v52 = vmul.f32 %v1497_v41, %v333_v51 }
 0x2e9   :  { %v342_v53 = vsel %vm341_vm7, %v335_v52, 0.0 }
 0x2ea   :  { %347 = vrot.lane.b32.xlu0 %v342_v53, %s1594_s16 }
 0x35c   :  { %v348_v54 = vpop.permute.xlu0 %347 }
 0x35d   :  { %1403 = vmatmul.mubr.msk.f32.vlgmr.msra.gmra.mxu1 %vm235_vm8, %v348_v54 }
 0x35e   :  { %1406 = vmatpush3.msra.mxu1 %v1654_v9  ;;  %1413 = vmatprep.mubr.msk.f32.mxu1 %vm1591_vm0, %v1590_v1 }
 0x35f   :  { %1407 = vmatprep.subr.mxu1 %v1590_v1 }
 0x360   :  { %1408 = vmatpush3.msra.mxu1 %v1661_v11 }
 0x361   :  { %1409 = vmatprep.subr.mxu1 %v1590_v1 }
 0x362   :  { %1410 = vmatpush3.msra.mxu1 %v1668_v13 }
 0x363   :  { %1411 = vmatprep.subr.mxu1 %v1590_v1 }
 0x364   :  { %1412 = vmatpush3.msra.mxu1 %v1674_v15 }
 0x365   :  { %1416 = vmatprep.subr.mxu1 %v1590_v1 }
 0x41d   :  { %v417_v55 = vpop.f32.mrf.mxu1 }
 0x41e   :  { %v421_v56 = vadd.f32 %v1373_v33, %v417_v55 }
 0x41f   :  { %v1404_v57 = vpop.f32.mrf.mxu1 }
 0x420   :  { %v422_v58 = vmul.f32 %v421_v56, %v1709_v35 }
 0x422   :  { %v1248_v59 = vmul.f32 -1.442695, %v422_v58 }
 0x424   :  { %1500 = vpow2.f32 %v1248_v59 }
 0x431   :  { %v1501_v60 = vpop.eup %1500 }
 0x432   :  { %v426_v61 = vadd.f32 1.0, %v1501_v60 }
 0x434   :  { %1502 = vrcp.f32 %v426_v61 }
 0x441   :  { %v1503_v62 = vpop.eup %1502 }
 0x442   :  { %v429_v63 = vmul.f32 2.0, %v1503_v62  ;;  %v431_v10 = vmul.f32 %v1503_v62, %v343_v8 }
 0x444   :  { %v1249_v2 = vadd.f32 -1.0, %v429_v63  ;;  %v673_v63 = vsel %vm672_vm15, 1, %v1589_v0 }
 0x446   :  { %433 = vrot.lane.b32.xlu1 %v1249_v2, %s1593_s3  ;;  %v42_v2 = vld [vmem:[%s1894_s0 + $0x20] sm:$0xff] }
 0x44a   :  { %451 = vperm.xlu1 %1493, %v449_v4  }
 0x44e   :  { %55 = vperm.xlu1 %1493, %v40_v5  }
 0x4b8   :  { %v434_v6 = vpop.permute.xlu1 %433 }
 0x4b9   :  { %v436_v7 = vmul.f32 %v1503_v62, %v434_v6 }
 0x4bb   :  { %438 = vrot.lane.b32.xlu0 %v436_v7, %s1594_s16 }
 0x4c5   :  { %v452_v14 = vpop.permute.xlu1 %451 }
 0x4c6   :  { %vm453_vm11 = vcmp.eq.s32.totalorder %v452_v14, 1 }
 0x4c9   :  { %v56_v17 = vpop.permute.xlu1 %55 }
 0x4ca   :  { %vm74_vm10 = vcmp.eq.s32.totalorder %v1692_v27, %v56_v17  ;;  %v43_v17 = vld [vmem:[%s1894_s0 + $0x28] sm:$0xff] }
 0x4cb   :  { %1374 = vmatprep.mubr.msk.f32.mxu0 %vm74_vm10, %v1592_v29 }
 0x52d   :  { %v439_v12 = vpop.permute.xlu0 %438 }
 0x52e   :  { %v441_v16 = vadd.f32 %v439_v12, %v431_v10 }
 0x530   :  { %1504 = vtanh.f32 %v441_v16  ;;  %v455_v43 = vsel %vm453_vm11, %v441_v16, %v343_v8 }
 0x53d   :  { %v1505_v18 = vpop.eup %1504 }
 0x53e   :  { %444 = vrot.lane.b32.xlu0 %v1505_v18, %s1593_s3 }
 0x542   :  { %58 = vperm.xlu0 %1492, %v41_v19  }
 0x5b0   :  { %v445_v20 = vpop.permute.xlu0 %444 }
 0x5b1   :  { %v447_v21 = vmul.f32 %v1503_v62, %v445_v20 }
 0x5b3   :  { %v454_v22 = vsel %vm453_vm11, %v447_v21, %v342_v53  ;;  %vm1008_vm11 = vcmp.gt.s32.totalorder %v1643_v3, 6 }
 0x5b4   :  { %459 = vrot.lane.b32.xlu1 %v454_v22, %s1594_s16 }
 0x5bd   :  { %v59_v23 = vpop.permute.xlu0 %58 }
 0x5be   :  { %vm75_vm12 = vcmp.eq.s32.totalorder %v1692_v27, %v59_v23 }
 0x5bf   :  { %1375 = vmatmul.mubr.msk.f32.gmra.mxu0 %vm75_vm12, %v1592_v29  ;;  %vm1120_vm12 = vcmp.gt.s32.totalorder %v1643_v3, 7  ;;  %v1129_v3 = vld [vmem:[%s1898_s4 + $0x10] sm:$0xff] }
 0x626   :  { %v460_v24 = vpop.permute.xlu1 %459 }
 0x627   :  { %1414 = vmatmul.mubr.msk.f32.vlgmr.msra.gmra.mxu1 %vm235_vm8, %v460_v24 }
 0x628   :  { %1417 = vmatpush3.msra.mxu1 %v1654_v9  ;;  %1424 = vmatprep.mubr.msk.f32.mxu1 %vm1591_vm0, %v1590_v1 }
 0x629   :  { %1418 = vmatprep.subr.mxu1 %v1590_v1 }
 0x62a   :  { %1419 = vmatpush3.msra.mxu1 %v1661_v11 }
 0x62b   :  { %1420 = vmatprep.subr.mxu1 %v1590_v1 }
 0x62c   :  { %1421 = vmatpush3.msra.mxu1 %v1668_v13 }
 0x62d   :  { %1422 = vmatprep.subr.mxu1 %v1590_v1 }
 0x62e   :  { %1423 = vmatpush3.msra.mxu1 %v1674_v15 }
 0x62f   :  { %1427 = vmatprep.subr.mxu1 %v1590_v1 }
 0x67f   :  { %v1376_v25 = vpop.f32.mrf.mxu0 }
 0x681   :  { %v188_v26 = vpop.f32.mrf.mxu0 }
 0x6e7   :  { %v529_v28 = vpop.f32.mrf.mxu1 }
 0x6e8   :  { %v533_v30 = vadd.f32 %v529_v28, %v188_v26 }
 0x6e9   :  { %v1415_v31 = vpop.f32.mrf.mxu1 }
 0x6ea   :  { %v534_v32 = vmul.f32 %v533_v30, %v1709_v35 }
 0x6ec   :  { %v1251_v33 = vmul.f32 -1.442695, %v534_v32 }
 0x6ee   :  { %1506 = vpow2.f32 %v1251_v33 }
 0x6fb   :  { %v1507_v34 = vpop.eup %1506 }
 0x6fc   :  { %v538_v36 = vadd.f32 1.0, %v1507_v34 }
 0x6fe   :  { %1508 = vrcp.f32 %v538_v36 }
 0x70b   :  { %v1509_v37 = vpop.eup %1508 }
 0x70c   :  { %v541_v38 = vmul.f32 2.0, %v1509_v37  ;;  %v543_v44 = vmul.f32 %v1509_v37, %v455_v43 }
 0x70e   :  { %v1252_v39 = vadd.f32 -1.0, %v541_v38  ;;  %v785_v38 = vsel %vm784_vm4, 1, %v1589_v0 }
 0x710   :  { %545 = vrot.lane.b32.xlu0 %v1252_v39, %s1593_s3  ;;  %v44_v39 = vld [vmem:[%s1894_s0 + $0x30] sm:$0xff] }
 0x714   :  { %563 = vperm.xlu0 %1492, %v561_v40  }
 0x782   :  { %v546_v41 = vpop.permute.xlu0 %545 }
 0x783   :  { %v548_v42 = vmul.f32 %v1509_v37, %v546_v41 }
 0x785   :  { %550 = vrot.lane.b32.xlu1 %v548_v42, %s1594_s16 }
 0x78f   :  { %v564_v48 = vpop.permute.xlu0 %563 }
 0x790   :  { %vm565_vm14 = vcmp.eq.s32.totalorder %v564_v48, 1 }
 0x7f7   :  { %v551_v45 = vpop.permute.xlu1 %550 }
 0x7f8   :  { %v553_v46 = vadd.f32 %v551_v45, %v543_v44 }
 0x7fa   :  { %1510 = vtanh.f32 %v553_v46  ;;  %v567_v8 = vsel %vm565_vm14, %v553_v46, %v455_v43 }
 0x807   :  { %v1511_v47 = vpop.eup %1510 }
 0x808   :  { %556 = vrot.lane.b32.xlu1 %v1511_v47, %s1593_s3 }
 0x87a   :  { %v557_v49 = vpop.permute.xlu1 %556 }
 0x87b   :  { %v559_v50 = vmul.f32 %v1509_v37, %v557_v49  ;;  %v45_v49 = vld [vmem:[%s1894_s0 + $0x38] sm:$0xff] }
 0x87d   :  { %v566_v51 = vsel %vm565_vm14, %v559_v50, %v454_v22 }
 0x87e   :  { %571 = vrot.lane.b32.xlu0 %v566_v51, %s1594_s16 }
 0x8f0   :  { %v572_v52 = vpop.permute.xlu0 %571 }
 0x8f1   :  { %1425 = vmatmul.mubr.msk.f32.vlgmr.msra.gmra.mxu1 %vm235_vm8, %v572_v52 }
 0x8f2   :  { %1428 = vmatpush3.msra.mxu1 %v1654_v9  ;;  %1435 = vmatprep.mubr.msk.f32.mxu1 %vm1591_vm0, %v1590_v1 }
 0x8f3   :  { %1429 = vmatprep.subr.mxu1 %v1590_v1 }
 0x8f4   :  { %1430 = vmatpush3.msra.mxu1 %v1661_v11 }
 0x8f5   :  { %1431 = vmatprep.subr.mxu1 %v1590_v1 }
 0x8f6   :  { %1432 = vmatpush3.msra.mxu1 %v1668_v13 }
 0x8f7   :  { %1433 = vmatprep.subr.mxu1 %v1590_v1 }
 0x8f8   :  { %1434 = vmatpush3.msra.mxu1 %v1674_v15 }
 0x8f9   :  { %1449 = vmatprep.subr.mxu1 %v1590_v1 }
 0x9b1   :  { %v641_v53 = vpop.f32.mrf.mxu1 }
 0x9b2   :  { %v645_v54 = vadd.f32 %v1376_v25, %v641_v53 }
 0x9b3   :  { %v1426_v55 = vpop.f32.mrf.mxu1 }
 0x9b4   :  { %v646_v56 = vmul.f32 %v645_v54, %v1709_v35 }
 0x9b6   :  { %v1254_v57 = vmul.f32 -1.442695, %v646_v56 }
 0x9b8   :  { %1512 = vpow2.f32 %v1254_v57 }
 0x9c5   :  { %v1513_v58 = vpop.eup %1512 }
 0x9c6   :  { %v650_v59 = vadd.f32 1.0, %v1513_v58 }
 0x9c8   :  { %1514 = vrcp.f32 %v650_v59 }
 0x9d5   :  { %v1515_v60 = vpop.eup %1514 }
 0x9d6   :  { %v653_v61 = vmul.f32 2.0, %v1515_v60  ;;  %v655_v10 = vmul.f32 %v1515_v60, %v567_v8 }
 0x9d8   :  { %v1255_v62 = vadd.f32 -1.0, %v653_v61 }
 0x9da   :  { %657 = vrot.lane.b32.xlu1 %v1255_v62, %s1593_s3 }
 0x9de   :  { %675 = vperm.xlu1 %1493, %v673_v63  }
 0x9e2   :  { %61 = vperm.xlu1 %1493, %v42_v2  }
 0xa4c   :  { %v658_v4 = vpop.permute.xlu1 %657 }
 0xa4d   :  { %v660_v5 = vmul.f32 %v1515_v60, %v658_v4 }
 0xa4f   :  { %662 = vrot.lane.b32.xlu0 %v660_v5, %s1594_s16 }
 0xa59   :  { %v676_v6 = vpop.permute.xlu1 %675 }
 0xa5a   :  { %vm677_vm2 = vcmp.eq.s32.totalorder %v676_v6, 1 }
 0xa5d   :  { %v62_v7 = vpop.permute.xlu1 %61 }
 0xa5e   :  { %vm76_vm1 = vcmp.eq.s32.totalorder %v1692_v27, %v62_v7 }
 0xa5f   :  { %1377 = vmatprep.mubr.msk.f32.mxu0 %vm76_vm1, %v1592_v29 }
 0xac1   :  { %v663_v12 = vpop.permute.xlu0 %662 }
 0xac2   :  { %v665_v14 = vadd.f32 %v663_v12, %v655_v10 }
 0xac4   :  { %1516 = vtanh.f32 %v665_v14  ;;  %v679_v44 = vsel %vm677_vm2, %v665_v14, %v567_v8 }
 0xad1   :  { %v1517_v16 = vpop.eup %1516 }
 0xad2   :  { %668 = vrot.lane.b32.xlu0 %v1517_v16, %s1593_s3 }
 0xad6   :  { %64 = vperm.xlu0 %1492, %v43_v17  }
 0xb44   :  { %v669_v18 = vpop.permute.xlu0 %668 }
 0xb45   :  { %v671_v19 = vmul.f32 %v1515_v60, %v669_v18 }
 0xb47   :  { %v678_v20 = vsel %vm677_vm2, %v671_v19, %v566_v51 }
 0xb48   :  { %683 = vrot.lane.b32.xlu1 %v678_v20, %s1594_s16 }
 0xb51   :  { %v65_v21 = vpop.permute.xlu0 %64 }
 0xb52   :  { %vm77_vm3 = vcmp.eq.s32.totalorder %v1692_v27, %v65_v21 }
 0xb53   :  { %1378 = vmatmul.mubr.msk.f32.gmra.mxu0 %vm77_vm3, %v1592_v29 }
 0xbba   :  { %v684_v22 = vpop.permute.xlu1 %683 }
 0xbbb   :  { %1436 = vmatmul.mubr.msk.f32.vlgmr.msra.gmra.mxu1 %vm235_vm8, %v684_v22 }
 0xbbc   :  { %1450 = vmatpush3.msra.mxu1 %v1654_v9  ;;  %1457 = vmatprep.mubr.msk.f32.mxu1 %vm1591_vm0, %v1590_v1 }
 0xbbd   :  { %1451 = vmatprep.subr.mxu1 %v1590_v1 }
 0xbbe   :  { %1452 = vmatpush3.msra.mxu1 %v1661_v11 }
 0xbbf   :  { %1453 = vmatprep.subr.mxu1 %v1590_v1 }
 0xbc0   :  { %1454 = vmatpush3.msra.mxu1 %v1668_v13 }
 0xbc1   :  { %1455 = vmatprep.subr.mxu1 %v1590_v1 }
 0xbc2   :  { %1456 = vmatpush3.msra.mxu1 %v1674_v15 }
 0xbc3   :  { %1471 = vmatprep.subr.mxu1 %v1590_v1 }
 0xc13   :  { %v1379_v23 = vpop.f32.mrf.mxu0 }
 0xc15   :  { %v198_v24 = vpop.f32.mrf.mxu0 }
 0xc7b   :  { %v753_v25 = vpop.f32.mrf.mxu1 }
 0xc7c   :  { %v757_v26 = vadd.f32 %v753_v25, %v198_v24 }
 0xc7d   :  { %v1437_v28 = vpop.f32.mrf.mxu1 }
 0xc7e   :  { %v758_v30 = vmul.f32 %v757_v26, %v1709_v35  ;;  %v1009_v28 = vsel %vm1008_vm11, 1, %v1589_v0 }
 0xc80   :  { %v1257_v31 = vmul.f32 -1.442695, %v758_v30 }
 0xc82   :  { %1518 = vpow2.f32 %v1257_v31 }
 0xc8f   :  { %v1519_v32 = vpop.eup %1518 }
 0xc90   :  { %v762_v33 = vadd.f32 1.0, %v1519_v32 }
 0xc92   :  { %1520 = vrcp.f32 %v762_v33 }
 0xc9f   :  { %v1521_v34 = vpop.eup %1520 }
 0xca0   :  { %v765_v36 = vmul.f32 2.0, %v1521_v34  ;;  %v767_v45 = vmul.f32 %v1521_v34, %v679_v44 }
 0xca2   :  { %v1258_v37 = vadd.f32 -1.0, %v765_v36 }
 0xca4   :  { %769 = vrot.lane.b32.xlu0 %v1258_v37, %s1593_s3 }
 0xca8   :  { %787 = vperm.xlu0 %1492, %v785_v38  }
 0xcac   :  { %67 = vperm.xlu0 %1492, %v44_v39  }
 0xd16   :  { %v770_v40 = vpop.permute.xlu0 %769 }
 0xd17   :  { %v772_v41 = vmul.f32 %v1521_v34, %v770_v40 }
 0xd19   :  { %774 = vrot.lane.b32.xlu1 %v772_v41, %s1594_s16 }
 0xd23   :  { %v788_v42 = vpop.permute.xlu0 %787 }
 0xd24   :  { %vm789_vm6 = vcmp.eq.s32.totalorder %v788_v42, 1 }
 0xd27   :  { %v68_v43 = vpop.permute.xlu0 %67 }
 0xd28   :  { %vm78_vm5 = vcmp.eq.s32.totalorder %v1692_v27, %v68_v43 }
 0xd29   :  { %1380 = vmatprep.mubr.msk.f32.mxu0 %vm78_vm5, %v1592_v29 }
 0xd8b   :  { %v775_v46 = vpop.permute.xlu1 %774 }
 0xd8c   :  { %v777_v47 = vadd.f32 %v775_v46, %v767_v45 }
 0xd8e   :  { %1522 = vtanh.f32 %v777_v47  ;;  %v791_v2 = vsel %vm789_vm6, %v777_v47, %v679_v44 }
 0xd9b   :  { %v1523_v48 = vpop.eup %1522 }
 0xd9c   :  { %780 = vrot.lane.b32.xlu1 %v1523_v48, %s1593_s3 }
 0xda0   :  { %70 = vperm.xlu1 %1493, %v45_v49  }
 0xe0e   :  { %v781_v50 = vpop.permute.xlu1 %780 }
 0xe0f   :  { %v783_v51 = vmul.f32 %v1521_v34, %v781_v50 }
 0xe11   :  { %v790_v52 = vsel %vm789_vm6, %v783_v51, %v678_v20 }
 0xe12   :  { %795 = vrot.lane.b32.xlu0 %v790_v52, %s1594_s16 }
 0xe1b   :  { %v71_v53 = vpop.permute.xlu1 %70 }
 0xe1c   :  { %vm79_vm7 = vcmp.eq.s32.totalorder %v1692_v27, %v71_v53  ;;  %v1121_v53 = vsel %vm1120_vm12, 1, %v1589_v0 }
 0xe1d   :  { %1381 = vmatmul.mubr.msk.f32.gmra.mxu0 %vm79_vm7, %v1592_v29 }
 0xe1e   :  { %1446 = vmatprep.mubr.msk.f32.mxu0 %vm1591_vm0, %v1590_v1 }
 0xe84   :  { %v796_v54 = vpop.permute.xlu0 %795 }
 0xe85   :  { %1447 = vmatmul.mubr.msk.f32.vlgmr.msra.gmra.mxu0 %vm235_vm8, %v796_v54 }
 0xe86   :  { %1461 = vmatpush3.msra.mxu0 %v1654_v9  ;;  %1468 = vmatprep.mubr.msk.f32.mxu0 %vm1591_vm0, %v1590_v1 }
 0xe87   :  { %1462 = vmatprep.subr.mxu0 %v1590_v1 }
 0xe88   :  { %1463 = vmatpush3.msra.mxu0 %v1661_v11 }
 0xe89   :  { %1464 = vmatprep.subr.mxu0 %v1590_v1 }
 0xe8a   :  { %1465 = vmatpush3.msra.mxu0 %v1668_v13 }
 0xe8b   :  { %1466 = vmatprep.subr.mxu0 %v1590_v1 }
 0xe8c   :  { %1467 = vmatpush3.msra.mxu0 %v1674_v15  ;;  %v897_v15 = vsel %vm896_vm9, 1, %v1589_v0  ;;  %v1128_v0 = vld [vmem:[%s1898_s4 + $0x8] sm:$0xff] }
 0xedd   :  { %v1839_v27 = vpop.f32.mrf.mxu0 }
 0xedf   :  { %v208_v29 = vpop.f32.mrf.mxu0 }
 0xf45   :  { %v865_v55 = vpop.f32.mrf.mxu0 }
 0xf46   :  { %v869_v9 = vadd.f32 %v1379_v23, %v865_v55 }
 0xf47   :  { %v1448_v56 = vpop.f32.mrf.mxu0 }
 0xf48   :  { %v870_v57 = vmul.f32 %v869_v9, %v1709_v35  ;;  %v1130_v56 = vld [vmem:[%s1898_s4 + $0x18] sm:$0xff] }
 0xf4a   :  { %v1260_v58 = vmul.f32 -1.442695, %v870_v57  ;;  %v1127_v57 = vld [vmem:[%s1898_s4] sm:$0xff]  ;;  %s1595_s4 = smov [#allocation6]  }
 0xf4b   :  { %s1220_s12 = sshll.u32 %s1595_s4, 4  ;;  %s1221_s12 = int_to_ptr.vmem [resolvable:$true] %s1220_s12 }
 0xf4c   :  { %1524 = vpow2.f32 %v1260_v58  ;;  %s1562_s13 = scalar_lea.vmem %s1221_s12, 128  ;;  %p1567_p6 = scmp.lt.s32.totalorder %s1221_s12, %s1221_s12 }
 0xf4d   :  { %p1563_p5 = scmp.ne.s32.totalorder %s1221_s12, %s1562_s13  ;;  %p1568_p7 = scmp.lt.s32.totalorder %s1562_s13, %s1562_s13 }
 0xf4f   :  { %p1569_p8 = por %p1568_p7, %p1567_p6 }
 0xf51   :  { %p1570_p9 = pnand %p1569_p8, %p1563_p5 }
 0xf59   :  { %v1525_v59 = vpop.eup %1524 }
 0xf5a   :  { %v874_v11 = vadd.f32 1.0, %v1525_v59 }
 0xf5c   :  { %1526 = vrcp.f32 %v874_v11 }
 0xf69   :  { %v1527_v60 = vpop.eup %1526 }
 0xf6a   :  { %v877_v61 = vmul.f32 2.0, %v1527_v60  ;;  %v879_v4 = vmul.f32 %v1527_v60, %v791_v2 }
 0xf6c   :  { %v1261_v13 = vadd.f32 -1.0, %v877_v61 }
 0xf6e   :  { %881 = vrot.lane.b32.xlu1 %v1261_v13, %s1593_s3 }
 0xf72   :  { %899 = vperm.xlu1 %1493, %v897_v15   ;;  %v1268_v15 = vld [vmem:[%s1899_s5] ss:$0 sm:$0xff] }
 0xfe0   :  { %v882_v62 = vpop.permute.xlu1 %881 }
 0xfe1   :  { %v884_v63 = vmul.f32 %v1527_v60, %v882_v62 }
 0xfe3   :  { %886 = vrot.lane.b32.xlu0 %v884_v63, %s1594_s16 }
 0xfed   :  { %v900_v8 = vpop.permute.xlu1 %899 }
 0xfee   :  { %vm901_vm10 = vcmp.eq.s32.totalorder %v900_v8, 1 }
0x1055   :  { %v887_v5 = vpop.permute.xlu0 %886 }
0x1056   :  { %v889_v6 = vadd.f32 %v887_v5, %v879_v4 }
0x1058   :  { %1528 = vtanh.f32 %v889_v6  ;;  %v903_v32 = vsel %vm901_vm10, %v889_v6, %v791_v2 }
0x1065   :  { %v1529_v7 = vpop.eup %1528 }
0x1066   :  { %892 = vrot.lane.b32.xlu0 %v1529_v7, %s1593_s3 }
0x10d8   :  { %v893_v10 = vpop.permute.xlu0 %892 }
0x10d9   :  { %v895_v12 = vmul.f32 %v1527_v60, %v893_v10 }
0x10db   :  { %v902_v14 = vsel %vm901_vm10, %v895_v12, %v790_v52 }
0x10dc   :  { %907 = vrot.lane.b32.xlu1 %v902_v14, %s1594_s16 }
0x114e   :  { %v908_v16 = vpop.permute.xlu1 %907 }
0x114f   :  { %1458 = vmatmul.mubr.msk.f32.vlgmr.msra.gmra.mxu1 %vm235_vm8, %v908_v16 }
0x1150   :  { %1479 = vmatprep.mubr.msk.f32.mxu1 %vm1591_vm0, %v1590_v1  ;;  %1472 = vmatpush3.msra.mxu1 %v1130_v56 }
0x1151   :  { %1473 = vmatprep.subr.mxu1 %v1590_v1 }
0x1152   :  { %1474 = vmatpush3.msra.mxu1 %v1129_v3 }
0x1153   :  { %1475 = vmatprep.subr.mxu1 %v1590_v1 }
0x1154   :  { %1476 = vmatpush3.msra.mxu1 %v1128_v0 }
0x1155   :  { %1477 = vmatprep.subr.mxu1 %v1590_v1 }
0x1156   :  { %1478 = vmatpush3.msra.mxu1 %v1127_v57 }
0x120f   :  { %v977_v17 = vpop.f32.mrf.mxu1 }
0x1210   :  { %v981_v18 = vadd.f32 %v977_v17, %v208_v29 }
0x1211   :  { %v1459_v19 = vpop.f32.mrf.mxu1 }
0x1212   :  { %v982_v20 = vmul.f32 %v981_v18, %v1709_v35 }
0x1214   :  { %v1263_v21 = vmul.f32 -1.442695, %v982_v20 }
0x1216   :  { %1530 = vpow2.f32 %v1263_v21 }
0x1223   :  { %v1531_v22 = vpop.eup %1530 }
0x1224   :  { %v986_v23 = vadd.f32 1.0, %v1531_v22 }
0x1226   :  { %1532 = vrcp.f32 %v986_v23 }
0x1233   :  { %v1533_v24 = vpop.eup %1532 }
0x1234   :  { %v989_v25 = vmul.f32 2.0, %v1533_v24  ;;  %v991_v33 = vmul.f32 %v1533_v24, %v903_v32 }
0x1236   :  { %v1264_v26 = vadd.f32 -1.0, %v989_v25 }
0x1238   :  { %993 = vrot.lane.b32.xlu0 %v1264_v26, %s1593_s3 }
0x123c   :  { %1011 = vperm.xlu0 %1492, %v1009_v28  }
0x12aa   :  { %v994_v30 = vpop.permute.xlu0 %993 }
0x12ab   :  { %v996_v31 = vmul.f32 %v1533_v24, %v994_v30 }
0x12ad   :  { %998 = vrot.lane.b32.xlu1 %v996_v31, %s1594_s16 }
0x12b7   :  { %v1012_v38 = vpop.permute.xlu0 %1011 }
0x12b8   :  { %vm1013_vm0 = vcmp.eq.s32.totalorder %v1012_v38, 1 }
0x131f   :  { %v999_v34 = vpop.permute.xlu1 %998 }
0x1320   :  { %v1001_v36 = vadd.f32 %v999_v34, %v991_v33 }
0x1322   :  { %1534 = vtanh.f32 %v1001_v36 }
0x132f   :  { %v1535_v37 = vpop.eup %1534 }
0x1330   :  { %1004 = vrot.lane.b32.xlu1 %v1535_v37, %s1593_s3 }
0x13a2   :  { %v1005_v39 = vpop.permute.xlu1 %1004 }
0x13a3   :  { %v1007_v40 = vmul.f32 %v1533_v24, %v1005_v39 }
0x13a5   :  { %v1014_v41 = vsel %vm1013_vm0, %v1007_v40, %v902_v14 }
0x13a6   :  { %1019 = vrot.lane.b32.xlu0 %v1014_v41, %s1594_s16 }
0x1418   :  { %v1020_v42 = vpop.permute.xlu0 %1019 }
0x1419   :  { %1469 = vmatmul.mubr.msk.f32.vlgmr.msra.gmra.mxu0 %vm235_vm8, %v1020_v42 }
0x14d9   :  { %v1089_v43 = vpop.f32.mrf.mxu0 }
0x14da   :  { %v1093_v44 = vadd.f32 %v1839_v27, %v1089_v43 }
0x14db   :  { %v1470_v45 = vpop.f32.mrf.mxu0 }
0x14dc   :  { %v1094_v46 = vmul.f32 %v1093_v44, %v1709_v35  ;;  %v1015_v35 = vsel %vm1013_vm0, %v1001_v36, %v903_v32 }
0x14de   :  { %v1266_v47 = vmul.f32 -1.442695, %v1094_v46 }
0x14e0   :  { %1536 = vpow2.f32 %v1266_v47 }
0x14ed   :  { %v1537_v48 = vpop.eup %1536 }
0x14ee   :  { %v1098_v49 = vadd.f32 1.0, %v1537_v48 }
0x14f0   :  { %1538 = vrcp.f32 %v1098_v49 }
0x14fd   :  { %v1539_v50 = vpop.eup %1538 }
0x14fe   :  { %v1101_v51 = vmul.f32 2.0, %v1539_v50  ;;  %v1103_v29 = vmul.f32 %v1539_v50, %v1015_v35 }
0x1500   :  { %v1267_v52 = vadd.f32 -1.0, %v1101_v51 }
0x1502   :  { %1105 = vrot.lane.b32.xlu1 %v1267_v52, %s1593_s3 }
0x1506   :  { %1123 = vperm.xlu1 %1493, %v1121_v53  }
0x1574   :  { %v1106_v54 = vpop.permute.xlu1 %1105 }
0x1575   :  { %v1108_v27 = vmul.f32 %v1539_v50, %v1106_v54 }
0x1577   :  { %1110 = vrot.lane.b32.xlu0 %v1108_v27, %s1594_s16 }
0x1581   :  { %v1124_v59 = vpop.permute.xlu1 %1123 }
0x1582   :  { %vm1125_vm13 = vcmp.eq.s32.totalorder %v1124_v59, 1 }
0x15e9   :  { %v1111_v55 = vpop.permute.xlu0 %1110 }
0x15ea   :  { %v1113_v9 = vadd.f32 %v1111_v55, %v1103_v29 }
0x15ec   :  { %1540 = vtanh.f32 %v1113_v9 }
0x15f9   :  { %v1541_v58 = vpop.eup %1540 }
0x15fa   :  { %1116 = vrot.lane.b32.xlu0 %v1541_v58, %s1593_s3 }
0x166c   :  { %v1117_v11 = vpop.permute.xlu0 %1116 }
0x166d   :  { %v1119_v60 = vmul.f32 %v1539_v50, %v1117_v11 }
0x166f   :  { %v1126_v61 = vsel %vm1125_vm13, %v1119_v60, %v1014_v41 }
0x1670   :  { %1139 = vrot.lane.b32.xlu1 %v1126_v61, %s1594_s16 }
0x16e2   :  { %v1140_v13 = vpop.permute.xlu1 %1139 }
0x16e3   :  { %1480 = vmatmul.mubr.msk.f32.vlgmr.msra.gmra.mxu1 %vm235_vm8, %v1140_v13 }
0x17a3   :  { %v1209_v1 = vpop.f32.mrf.mxu1 }
0x17a4   :  { %v1210_v62 = vadd.f32 %v1268_v15, %v1209_v1 }
0x17a5   :  { %v1481_v63 = vpop.f32.mrf.mxu1 }
0x17a6   :  { %1213 = vst [vmem:[#allocation6] sm:$0xff] %v1210_v62 }
0x17a7   :  { %1573 = shalt.err (!%p1570_p9)
}
0x17a8   :  { %1223 = dma.vmem_to_hbm [thread:$0]  %s1221_s12, 128, %s1900_s6, [#allocation5]  }
0x17a9   :  { %1584 = dma.done.wait [#allocation5], 128  }
0x17aa   :  { %1585 = vsyncadd [#allocation5], 4294967168 }
0x17ab   :  { %1227 = vsyncpa [#allocation4], 1 }
0x17ac   :  { %1228 = vsyncpa [#allocation5], 1 }

</bundles_post_ra>
